<compile_context>
chip_gen: v6e
topology: v6e:2x2x1
jax: 0.10.0
libtpu: 0.0.40
codegen_flags: <defaults>
</compile_context>

<pallas_src>
import functools

import jax
import jax.numpy as jnp
from jax.experimental import pallas as pl
from jax.experimental.pallas import tpu as pltpu


def _round_up(x, m):
    return ((x + m - 1) // m) * m


def _soft_clamp(x, low, high):
    x = jnp.tanh(x)
    return low + 0.5 * (high - low) * (x + 1.0)


def _make_kernel(n_layers, n_comp, action_dim, matmul_dtype):
    """Fused MLP + head kernel.  Operates on one (TILE_B, feature) batch tile."""
    M = n_comp * action_dim

    def kernel(x_ref, *refs):
        w_refs = refs[0:2 * n_layers:2]
        b_refs = refs[1:2 * n_layers:2]
        out_ref = refs[2 * n_layers]

        h = x_ref[...]
        for i in range(n_layers):
            a = h if matmul_dtype is None else h.astype(matmul_dtype)
            h = jnp.dot(a, w_refs[i][...], preferred_element_type=jnp.float32)
            h = h + b_refs[i][...]                       # f32 bias / accumulation
            if i < n_layers - 1:                         # ReLU on hidden layers only
                h = jnp.maximum(h, 0.0)

        # h: (TILE_B, OUT_PAD) — lane-dense slab (final layer is zero-padded).
        # Compute the whole head on this single slab with lane masks; one
        # full-width unmasked store per tile.
        lane = jax.lax.broadcasted_iota(jnp.int32, h.shape, dimension=1)
        is_logit = lane < n_comp
        is_mu = jnp.logical_and(lane >= n_comp, lane < n_comp + M)

        # Softmax over the mixture logits (lanes [0, n_comp)).  Exact divide so
        # each row of `cat` sums to 1; one divide per row is cheap.
        m = jnp.max(jnp.where(is_logit, h, -jnp.inf), axis=-1, keepdims=True)
        e = jnp.exp(jnp.where(is_logit, h - m, 0.0))
        denom = jnp.sum(jnp.where(is_logit, e, 0.0), axis=-1, keepdims=True)
        cat = e / denom

        # One tanh for the whole slab; both soft-clamps are affine in tanh(h).
        t1 = jnp.tanh(h) + 1.0
        mus = -2.0 + 2.0 * t1                            # soft_clamp(h, -2, 2)
        stds = jnp.exp(-5.0 + 2.5 * t1)                  # exp(soft_clamp(h, -5, 0))

        out_ref[...] = jnp.where(is_logit, cat, jnp.where(is_mu, mus, stds))

    return kernel


def mixed_gauss_mlp_forward(s, weights, biases, n_comp, action_dim,
                            max_tile_b=1024, use_bf16_matmul=None):
    """Returns (cat, mus, stds) — the parameters of the mixture distribution."""
    B = s.shape[0]
    x = s.reshape(B, -1).astype(jnp.float32)             # torch.flatten(s, start_dim=1)
    state_dim = x.shape[1]
    n_layers = len(weights)
    M = n_comp * action_dim
    out_dim = weights[-1].shape[1]                        # 2*n_comp*action_dim + n_comp
    OUT_PAD = _round_up(out_dim, 128)

    # bf16 MXU inputs (with f32 accumulation) only pay off once layer widths
    # reach MXU-tile scale; keep f32 weights for tiny MLPs.
    if use_bf16_matmul is None:
        use_bf16_matmul = max(int(w.shape[1]) for w in weights) >= 128
    matmul_dtype = jnp.bfloat16 if use_bf16_matmul else None
    w_dtype = jnp.bfloat16 if use_bf16_matmul else jnp.float32

    # Zero-pad the final layer to OUT_PAD output lanes -> lane-dense output.
    w_last = jnp.zeros((weights[-1].shape[0], OUT_PAD), jnp.float32)
    w_last = w_last.at[:, :out_dim].set(weights[-1].astype(jnp.float32))
    b_last = jnp.zeros((OUT_PAD,), jnp.float32).at[:out_dim].set(
        biases[-1].astype(jnp.float32))
    weights = list(weights[:-1]) + [w_last]
    biases = list(biases[:-1]) + [b_last]

    # ---- Batch tile selection ----
    # * Tile up to max_tile_b rows so the per-grid-step overhead is amortized.
    # * Derive TILE_B from the actual B so padding waste stays tiny.
    # * Split into >= 2 grid steps once each half is >= 512 rows so the
    #   "parallel" batch axis shards across both TensorCores on v7x.
    B_r8 = _round_up(max(B, 1), 8)
    n_steps = pl.cdiv(B_r8, max_tile_b)
    if n_steps < 2 and B_r8 >= 2 * 512:
        n_steps = 2
    TILE_B = _round_up(pl.cdiv(B_r8, n_steps), 8)
    B_pad = _round_up(B, TILE_B)
    if B_pad != B:
        x = jnp.pad(x, ((0, B_pad - B), (0, 0)))
    grid = (B_pad // TILE_B,)

    flat_params = []
    for w, b in zip(weights, biases):
        flat_params.append(w.astype(w_dtype))
        flat_params.append(b.reshape(1, -1).astype(jnp.float32))

    kernel = _make_kernel(n_layers, n_comp, action_dim, matmul_dtype)

    # x / out tiled over batch; weights & biases use a constant index_map so
    # they stay VMEM-resident across grid steps.
    in_specs = [pl.BlockSpec((TILE_B, state_dim), lambda i: (i, 0))]
    for w, b in zip(flat_params[0::2], flat_params[1::2]):
        in_specs.append(pl.BlockSpec(w.shape, lambda i: (0, 0)))
        in_specs.append(pl.BlockSpec(b.shape, lambda i: (0, 0)))
    out_spec = pl.BlockSpec((TILE_B, OUT_PAD), lambda i: (i, 0))

    param_bytes = sum(int(p.size) * p.dtype.itemsize for p in flat_params)
    flops = 2 * B_pad * sum(int(w.shape[0]) * int(w.shape[1])
                            for w in flat_params[0::2])
    transcendentals = 3 * B_pad * OUT_PAD                 # tanh + 2x exp per element
    bytes_accessed = 4 * int(x.size) + param_bytes + 4 * B_pad * OUT_PAD

    # Double-buffered activation tiles + (double-buffered) params.  Only set an
    # explicit VMEM limit when we approach v5e's smaller 16 MiB scoped default.
    est_vmem = 2 * TILE_B * (state_dim + OUT_PAD) * 4 + 2 * param_bytes
    cp_kwargs = dict(dimension_semantics=("parallel",))   # megacore on v7x
    if est_vmem > 12 * 1024 * 1024:
        cp_kwargs["vmem_limit_bytes"] = int(1.5 * est_vmem)

    out_full = pl.pallas_call(
        kernel,
        out_shape=jax.ShapeDtypeStruct((B_pad, OUT_PAD), jnp.float32),
        grid=grid,
        in_specs=in_specs,
        out_specs=out_spec,
        compiler_params=pltpu.CompilerParams(**cp_kwargs),
        cost_estimate=pl.CostEstimate(
            flops=flops, transcendentals=transcendentals,
            bytes_accessed=bytes_accessed),
    )(x, *flat_params)

    # Single slice of the valid region; the splits / reshape / transpose below
    # fuse into consumers under jit.
    out = out_full[:B, :out_dim]
    cat = out[:, :n_comp]
    mus = out[:, n_comp:n_comp + M].reshape(-1, n_comp, action_dim)
    # Faithful to the torch module: log_stds.exp().transpose(0, 1).reshape(...)
    # (interleaves batch into component/action dims — likely an upstream bug,
    # flagged rather than "fixed" here).
    stds = jnp.transpose(out[:, n_comp + M:n_comp + 2 * M], (1, 0)).reshape(
        -1, n_comp, action_dim)
    return cat, mus, stds


def _reference_forward(s, weights, biases, n_comp, action_dim, matmul_dtype=None):
    """Pure-JAX reference mirroring the torch module, for correctness checks."""
    B = s.shape[0]
    h = s.reshape(B, -1).astype(jnp.float32)
    for i, (w, b) in enumerate(zip(weights, biases)):
        if matmul_dtype is not None:
            h = jnp.dot(h.astype(matmul_dtype), w.astype(matmul_dtype),
                        preferred_element_type=jnp.float32) + b
        else:
            h = h @ w + b
        if i < len(weights) - 1:
            h = jnp.maximum(h, 0.0)
    M = n_comp * action_dim
    cat = jax.nn.softmax(h[:, :n_comp], axis=-1)
    mus = _soft_clamp(h[:, n_comp:n_comp + M], -2.0, 2.0)
    log_stds = _soft_clamp(h[:, n_comp + M:], -5.0, 0.0)
    stds = jnp.transpose(jnp.exp(log_stds), (1, 0)).reshape(-1, n_comp, action_dim)
    mus = mus.reshape(-1, n_comp, action_dim)
    return cat, mus, stds


def _init_params(key, state_dim, width, depth, output_dim):
    """Deterministic init: MLP = Linear(state,width) + ReLU,
    (depth-1) x [Linear(width,width) + ReLU], Linear(width,output_dim)."""
    dims = [state_dim] + [width] * depth + [output_dim]
    weights, biases = [], []
    for i in range(len(dims) - 1):
        key, kw, kb = jax.random.split(key, 3)
        fan_in = dims[i]
        bound = 1.0 / jnp.sqrt(fan_in)
        weights.append(jax.random.uniform(
            kw, (dims[i], dims[i + 1]), jnp.float32, -bound, bound))
        biases.append(jax.random.uniform(
            kb, (dims[i + 1],), jnp.float32, -bound, bound))
    return weights, biases


if __name__ == "__main__":
    # Small config consistent with the module.
    n_comp, action_dim = 4, 6
    width, depth = 32, 2
    B = 8
    s_shape = (B, 4, 8)                       # flattened -> state_dim = 32
    state_dim = 4 * 8
    output_dim = 2 * n_comp * action_dim + n_comp   # 52

    key = jax.random.PRNGKey(0)
    key, ks = jax.random.split(key)
    s = jax.random.normal(ks, s_shape, dtype=jnp.float32)
    weights, biases = _init_params(key, state_dim, width, depth, output_dim)

    # --- Run 1: default path (f32 matmul at width=32), single grid step ---
    fwd = jax.jit(functools.partial(
        mixed_gauss_mlp_forward, n_comp=n_comp, action_dim=action_dim))
    cat, mus, stds = fwd(s, weights, biases)
    jax.block_until_ready((cat, mus, stds))

    cat_r, mus_r, stds_r = _reference_forward(s, weights, biases, n_comp, action_dim)
    assert cat.shape == (B, n_comp)
    assert mus.shape == (B, n_comp, action_dim)
    assert stds.shape == (B, n_comp, action_dim)
    assert jnp.allclose(cat, cat_r, atol=1e-4, rtol=1e-4), "cat mismatch"
    assert jnp.allclose(mus, mus_r, atol=1e-4), "mus mismatch"
    assert jnp.allclose(stds, stds_r, atol=1e-4), "stds mismatch"
    # Exact softmax divide -> rows of cat sum to 1.
    assert jnp.allclose(jnp.sum(cat, axis=-1), 1.0, atol=1e-5), "cat not normalized"

    # --- Run 2: bf16-matmul path, ragged batch, multi-step grid.  max_tile_b=64
    # only forces several grid steps at this tiny B to exercise the software
    # pipeline + batch padding; the production default is 1024. ---
    B2 = 130
    key, ks2 = jax.random.split(key)
    s2 = jax.random.normal(ks2, (B2, 4, 8), dtype=jnp.float32)
    fwd_bf16 = jax.jit(functools.partial(
        mixed_gauss_mlp_forward, n_comp=n_comp, action_dim=action_dim,
        max_tile_b=64, use_bf16_matmul=True))
    cat2, mus2, stds2 = fwd_bf16(s2, weights, biases)
    jax.block_until_ready((cat2, mus2, stds2))

    cat2_r, mus2_r, stds2_r = _reference_forward(
        s2, weights, biases, n_comp, action_dim, matmul_dtype=jnp.bfloat16)
    assert cat2.shape == (B2, n_comp)
    assert mus2.shape == (B2, n_comp, action_dim)
    assert stds2.shape == (B2, n_comp, action_dim)
    assert jnp.allclose(cat2, cat2_r, atol=1e-2, rtol=1e-2), "bf16 cat mismatch"
    assert jnp.allclose(mus2, mus2_r, atol=1e-2), "bf16 mus mismatch"
    assert jnp.allclose(stds2, stds2_r, atol=1e-2), "bf16 stds mismatch"

    # NOTE: the stds transpose(0,1)-then-reshape interleaves batch into the
    # component/action dims; it is faithful to the torch module (likely a bug
    # in the original) and matched by the reference above.
    # TODO(synk): torch.distributions.MixtureSameFamily object itself has no
    # Pallas equivalent; the kernel returns its parameters (cat, mus, stds).
    print("KERNEL_OK")
</pallas_src>

<mosaic_0001>
module attributes {stable_mosaic.version = 11 : i64} {
  func.func @kernel(%arg0: i32, %arg1: memref<8x32xf32, #tpu.memory_space<vmem>>, %arg2: memref<32x32xf32, #tpu.memory_space<vmem>>, %arg3: memref<1x32xf32, #tpu.memory_space<vmem>>, %arg4: memref<32x32xf32, #tpu.memory_space<vmem>>, %arg5: memref<1x32xf32, #tpu.memory_space<vmem>>, %arg6: memref<32x128xf32, #tpu.memory_space<vmem>>, %arg7: memref<1x128xf32, #tpu.memory_space<vmem>>, %arg8: memref<8x128xf32, #tpu.memory_space<vmem>>) attributes {dimension_semantics = [#tpu.dimension_semantics<parallel>], iteration_bounds = array<i64: 1>, scalar_prefetch = 0 : i64, scratch_operands = 0 : i64, tpu.core_type = #tpu.core_type<tc>, window_params = [{transform_indices = @transform_0, window_bounds = array<i64: 8, 32>}, {pipeline_mode = #tpu.pipeline_mode<synchronous>, transform_indices = @transform_1, window_bounds = array<i64: 32, 32>}, {pipeline_mode = #tpu.pipeline_mode<synchronous>, transform_indices = @transform_2, window_bounds = array<i64: 1, 32>}, {pipeline_mode = #tpu.pipeline_mode<synchronous>, transform_indices = @transform_3, window_bounds = array<i64: 32, 32>}, {pipeline_mode = #tpu.pipeline_mode<synchronous>, transform_indices = @transform_4, window_bounds = array<i64: 1, 32>}, {pipeline_mode = #tpu.pipeline_mode<synchronous>, transform_indices = @transform_5, window_bounds = array<i64: 32, 128>}, {pipeline_mode = #tpu.pipeline_mode<synchronous>, transform_indices = @transform_6, window_bounds = array<i64: 1, 128>}, {transform_indices = @transform_7, window_bounds = array<i64: 8, 128>}]} {
    %c0 = arith.constant 0 : index
    %c0_0 = arith.constant 0 : index
    %0 = vector.load %arg1[%c0, %c0_0] : memref<8x32xf32, #tpu.memory_space<vmem>>, vector<8x32xf32>
    %c0_1 = arith.constant 0 : index
    %c0_2 = arith.constant 0 : index
    %1 = vector.load %arg2[%c0_1, %c0_2] : memref<32x32xf32, #tpu.memory_space<vmem>>, vector<32x32xf32>
    %cst = arith.constant dense<0.000000e+00> : vector<8x32xf32>
    %2 = tpu.matmul %0, %1, %cst {dimension_numbers = #tpu.dot_dimension_numbers<[1], [0], [0], [1], [0, 0, 1, 1], [], []>} : vector<8x32xf32>, vector<32x32xf32>, vector<8x32xf32> -> vector<8x32xf32>
    %c0_3 = arith.constant 0 : index
    %c0_4 = arith.constant 0 : index
    %3 = vector.load %arg3[%c0_3, %c0_4] : memref<1x32xf32, #tpu.memory_space<vmem>>, vector<1x32xf32>
    %4 = vector.broadcast %3 : vector<1x32xf32> to vector<8x32xf32>
    %5 = arith.addf %2, %4 : vector<8x32xf32>
    %cst_5 = arith.constant 0.000000e+00 : f32
    %6 = vector.broadcast %cst_5 : f32 to vector<8x32xf32>
    %7 = arith.maximumf %5, %6 : vector<8x32xf32>
    %c0_6 = arith.constant 0 : index
    %c0_7 = arith.constant 0 : index
    %8 = vector.load %arg4[%c0_6, %c0_7] : memref<32x32xf32, #tpu.memory_space<vmem>>, vector<32x32xf32>
    %cst_8 = arith.constant dense<0.000000e+00> : vector<8x32xf32>
    %9 = tpu.matmul %7, %8, %cst_8 {dimension_numbers = #tpu.dot_dimension_numbers<[1], [0], [0], [1], [0, 0, 1, 1], [], []>} : vector<8x32xf32>, vector<32x32xf32>, vector<8x32xf32> -> vector<8x32xf32>
    %c0_9 = arith.constant 0 : index
    %c0_10 = arith.constant 0 : index
    %10 = vector.load %arg5[%c0_9, %c0_10] : memref<1x32xf32, #tpu.memory_space<vmem>>, vector<1x32xf32>
    %11 = vector.broadcast %10 : vector<1x32xf32> to vector<8x32xf32>
    %12 = arith.addf %9, %11 : vector<8x32xf32>
    %cst_11 = arith.constant 0.000000e+00 : f32
    %13 = vector.broadcast %cst_11 : f32 to vector<8x32xf32>
    %14 = arith.maximumf %12, %13 : vector<8x32xf32>
    %c0_12 = arith.constant 0 : index
    %c0_13 = arith.constant 0 : index
    %15 = vector.load %arg6[%c0_12, %c0_13] : memref<32x128xf32, #tpu.memory_space<vmem>>, vector<32x128xf32>
    %cst_14 = arith.constant dense<0.000000e+00> : vector<8x128xf32>
    %16 = tpu.matmul %14, %15, %cst_14 {dimension_numbers = #tpu.dot_dimension_numbers<[1], [0], [0], [1], [0, 0, 1, 1], [], []>} : vector<8x32xf32>, vector<32x128xf32>, vector<8x128xf32> -> vector<8x128xf32>
    %c0_15 = arith.constant 0 : index
    %c0_16 = arith.constant 0 : index
    %17 = vector.load %arg7[%c0_15, %c0_16] : memref<1x128xf32, #tpu.memory_space<vmem>>, vector<1x128xf32>
    %18 = vector.broadcast %17 : vector<1x128xf32> to vector<8x128xf32>
    %19 = arith.addf %16, %18 : vector<8x128xf32>
    %20 = tpu.iota {dimensions = array<i32: 1>} : vector<8x128xi32>
    %c4_i32 = arith.constant 4 : i32
    %21 = vector.broadcast %c4_i32 : i32 to vector<8x128xi32>
    %22 = arith.cmpi slt, %20, %21 : vector<8x128xi32>
    %c4_i32_17 = arith.constant 4 : i32
    %23 = vector.broadcast %c4_i32_17 : i32 to vector<8x128xi32>
    %24 = arith.cmpi sge, %20, %23 : vector<8x128xi32>
    %c28_i32 = arith.constant 28 : i32
    %25 = vector.broadcast %c28_i32 : i32 to vector<8x128xi32>
    %26 = arith.cmpi slt, %20, %25 : vector<8x128xi32>
    %27 = arith.andi %24, %26 : vector<8x128xi1>
    %cst_18 = arith.constant 0xFF800000 : f32
    %28 = vector.broadcast %cst_18 : f32 to vector<8x128xf32>
    %29 = arith.select %22, %19, %28 : vector<8x128xi1>, vector<8x128xf32>
    %cst_19 = arith.constant dense<0xFF800000> : vector<8xf32>
    %30 = vector.multi_reduction <maximumf>, %29, %cst_19 [1] : vector<8x128xf32> to vector<8xf32>
    %31 = vector.shape_cast %30 : vector<8xf32> to vector<8x1xf32>
    %32 = vector.broadcast %31 : vector<8x1xf32> to vector<8x128xf32>
    %33 = arith.subf %19, %32 : vector<8x128xf32>
    %cst_20 = arith.constant 0.000000e+00 : f32
    %34 = vector.broadcast %cst_20 : f32 to vector<8x128xf32>
    %35 = arith.select %22, %33, %34 : vector<8x128xi1>, vector<8x128xf32>
    %36 = math.exp %35 : vector<8x128xf32>
    %cst_21 = arith.constant 0.000000e+00 : f32
    %37 = vector.broadcast %cst_21 : f32 to vector<8x128xf32>
    %38 = arith.select %22, %36, %37 : vector<8x128xi1>, vector<8x128xf32>
    %cst_22 = arith.constant dense<0.000000e+00> : vector<8xf32>
    %39 = vector.multi_reduction <add>, %38, %cst_22 [1] : vector<8x128xf32> to vector<8xf32>
    %40 = vector.shape_cast %39 : vector<8xf32> to vector<8x1xf32>
    %41 = vector.broadcast %40 : vector<8x1xf32> to vector<8x128xf32>
    %42 = arith.divf %36, %41 : vector<8x128xf32>
    %43 = math.tanh %19 : vector<8x128xf32>
    %cst_23 = arith.constant 1.000000e+00 : f32
    %44 = vector.broadcast %cst_23 : f32 to vector<8x128xf32>
    %45 = arith.addf %43, %44 : vector<8x128xf32>
    %cst_24 = arith.constant 2.000000e+00 : f32
    %46 = vector.broadcast %cst_24 : f32 to vector<8x128xf32>
    %47 = arith.mulf %46, %45 : vector<8x128xf32>
    %cst_25 = arith.constant -2.000000e+00 : f32
    %48 = vector.broadcast %cst_25 : f32 to vector<8x128xf32>
    %49 = arith.addf %48, %47 : vector<8x128xf32>
    %cst_26 = arith.constant 2.500000e+00 : f32
    %50 = vector.broadcast %cst_26 : f32 to vector<8x128xf32>
    %51 = arith.mulf %50, %45 : vector<8x128xf32>
    %cst_27 = arith.constant -5.000000e+00 : f32
    %52 = vector.broadcast %cst_27 : f32 to vector<8x128xf32>
    %53 = arith.addf %52, %51 : vector<8x128xf32>
    %54 = math.exp %53 : vector<8x128xf32>
    %55 = arith.select %27, %49, %54 : vector<8x128xi1>, vector<8x128xf32>
    %56 = arith.select %22, %42, %55 : vector<8x128xi1>, vector<8x128xf32>
    %c0_28 = arith.constant 0 : index
    %c0_29 = arith.constant 0 : index
    %57 = vector.load %arg8[%c0_28, %c0_29] : memref<8x128xf32, #tpu.memory_space<vmem>>, vector<8x128xf32>
    tpu.vector_store %arg8[%c0_28, %c0_29], %56 {strides = array<i32>} : memref<8x128xf32, #tpu.memory_space<vmem>>, vector<8x128xf32>,
    return
  }
  func.func @transform_0(%arg0: i32) -> (i32, i32) {
    %c0_i32 = arith.constant 0 : i32
    %c0_i32_0 = arith.constant 0 : i32
    return %arg0, %c0_i32 : i32, i32
  }
  func.func @transform_1(%arg0: i32) -> (i32, i32) {
    %c0_i32 = arith.constant 0 : i32
    %c0_i32_0 = arith.constant 0 : i32
    %c0_i32_1 = arith.constant 0 : i32
    return %c0_i32, %c0_i32_0 : i32, i32
  }
  func.func @transform_2(%arg0: i32) -> (i32, i32) {
    %c0_i32 = arith.constant 0 : i32
    %c0_i32_0 = arith.constant 0 : i32
    %c0_i32_1 = arith.constant 0 : i32
    return %c0_i32, %c0_i32_0 : i32, i32
  }
  func.func @transform_3(%arg0: i32) -> (i32, i32) {
    %c0_i32 = arith.constant 0 : i32
    %c0_i32_0 = arith.constant 0 : i32
    %c0_i32_1 = arith.constant 0 : i32
    return %c0_i32, %c0_i32_0 : i32, i32
  }
  func.func @transform_4(%arg0: i32) -> (i32, i32) {
    %c0_i32 = arith.constant 0 : i32
    %c0_i32_0 = arith.constant 0 : i32
    %c0_i32_1 = arith.constant 0 : i32
    return %c0_i32, %c0_i32_0 : i32, i32
  }
  func.func @transform_5(%arg0: i32) -> (i32, i32) {
    %c0_i32 = arith.constant 0 : i32
    %c0_i32_0 = arith.constant 0 : i32
    %c0_i32_1 = arith.constant 0 : i32
    return %c0_i32, %c0_i32_0 : i32, i32
  }
  func.func @transform_6(%arg0: i32) -> (i32, i32) {
    %c0_i32 = arith.constant 0 : i32
    %c0_i32_0 = arith.constant 0 : i32
    %c0_i32_1 = arith.constant 0 : i32
    return %c0_i32, %c0_i32_0 : i32, i32
  }
  func.func @transform_7(%arg0: i32) -> (i32, i32) {
    %c0_i32 = arith.constant 0 : i32
    %c0_i32_0 = arith.constant 0 : i32
    return %arg0, %c0_i32 : i32, i32
  }
}

</mosaic_0001>

<bundles_post_ra>
// kernel: mixed_gauss_mlp_forward.1
= control target key start
LH: loop header
LB: loop body
LE: loop exit
PB: predicated region body
PF: predicated region fallthrough
CT: control target
= control target key end

     0   :  { %v379_v0 = vmov 0.0   ;;  %vm380_vm0 = vmmov 0   ;;  %vm38_vm1 = vcmask 261120   ;;  %v282_v24 = vlaneseq  ;;  %s482_s1 = inlined_call_operand.vmem [shape: f32[32,32], index: 1, kind: input, shape index: {}]   ;;  %s483_s3 = inlined_call_operand.vmem [shape: f32[32,32], index: 3, kind: input, shape index: {}]   ;;  %s484_s0 = inlined_call_operand.vmem [shape: f32[8,32], index: 0, kind: input, shape index: {}]   ;;  %s485_s5 = inlined_call_operand.vmem [shape: f32[32,128], index: 5, kind: input, shape index: {}]   ;;  %s486_s2 = inlined_call_operand.vmem [shape: f32[1,32], index: 2, kind: input, shape index: {}]   ;;  %s487_s4 = inlined_call_operand.vmem [shape: f32[1,32], index: 4, kind: input, shape index: {}]   ;;  %s488_s6 = inlined_call_operand.vmem [shape: f32[1,128], index: 6, kind: input, shape index: {}]   ;;  %s489_s7 = inlined_call_operand.vmem [shape: f32[8,128], index: 7, kind: output, shape index: {}]  }
   0x1   :  { %336 = vmatprep.subr.mxu0 %v379_v0  ;;  %v30_v1 = vld [vmem:[%s482_s1 + $0x18] sm:$0xff]  ;;  %v29_v2 = vld [vmem:[%s482_s1 + $0x10] sm:$0xff]  ;;  %344 = vmatprep.mubr.msk.f32.mxu0 %vm380_vm0, %v379_v0  ;;  %v28_v4 = vld [vmem:[%s482_s1 + $0x8] sm:$0xff] }
   0x2   :  { %337 = vmatpush3.msra.mxu0 %v30_v1  ;;  %347 = vmatprep.subr.mxu1 %v379_v0  ;;  %v116_v3 = vld [vmem:[%s483_s3 + $0x18] sm:$0xff]  ;;  %v27_v5 = vld [vmem:[%s482_s1] sm:$0xff]  ;;  %v115_v7 = vld [vmem:[%s483_s3 + $0x10] sm:$0xff]  ;;  %v283_v25 = vand.u32 127, %v282_v24 }
   0x3   :  { %338 = vmatprep.subr.mxu0 %v379_v0  ;;  %348 = vmatpush3.msra.mxu1 %v116_v3  ;;  %v26_v6 = vld [vmem:[%s484_s0] sm:$0xff]  ;;  %v114_v8 = vld [vmem:[%s483_s3 + $0x8] sm:$0xff]  ;;  %v201_v10 = vld [vmem:[%s485_s5 + $0x18] sm:$0xff] }
   0x4   :  { %339 = vmatpush3.msra.mxu0 %v29_v2  ;;  %349 = vmatprep.subr.mxu1 %v379_v0  ;;  %v113_v9 = vld [vmem:[%s483_s3] sm:$0xff]  ;;  %v200_v16 = vld [vmem:[%s485_s5 + $0x10] sm:$0xff]  ;;  %v199_v17 = vld [vmem:[%s485_s5 + $0x8] sm:$0xff]  ;;  %vm284_vm2 = vcmp.lt.s32.totalorder %v283_v25, 4  ;;  %vm285_vm3 = vcmp.ge.s32.totalorder %v283_v25, 4  ;;  %vm286_vm4 = vcmp.lt.s32.totalorder %v283_v25, 28 }
   0x5   :  { %340 = vmatprep.subr.mxu0 %v379_v0  ;;  %355 = vmatprep.mubr.msk.f32.mxu1 %vm380_vm0, %v379_v0  ;;  %v315_v11 = vld [vmem:[%s486_s2] ss:$0 sm:$0xff]  ;;  %vm287_vm5 = vmand %vm285_vm3, %vm286_vm4 }
   0x6   :  { %341 = vmatpush3.msra.mxu0 %v28_v4  ;;  %350 = vmatpush3.msra.mxu1 %v115_v7  ;;  %v198_v18 = vld [vmem:[%s485_s5] sm:$0xff] }
   0x7   :  { %342 = vmatprep.subr.mxu0 %v379_v0  ;;  %351 = vmatprep.subr.mxu1 %v379_v0  ;;  %v317_v19 = vld [vmem:[%s487_s4] ss:$0 sm:$0xff] }
   0x8   :  { %343 = vmatpush3.msra.mxu0 %v27_v5  ;;  %352 = vmatpush3.msra.mxu1 %v114_v8  ;;  %v319_v26 = vld [vmem:[%s488_s6] ss:$0 sm:$0xff] }
   0x9   :  { %345 = vmatmul.mubr.msk.f32.vlgmr.msra.gmra.mxu0 %vm38_vm1, %v26_v6  ;;  %358 = vmatprep.subr.mxu0 %v379_v0 }
   0xa   :  { %366 = vmatprep.mubr.msk.f32.mxu0 %vm380_vm0, %v379_v0  ;;  %353 = vmatprep.subr.mxu1 %v379_v0 }
   0xb   :  { %354 = vmatpush3.msra.mxu1 %v113_v9  ;;  %359 = vmatpush3.msra.mxu0 %v201_v10 }
   0xc   :  { %360 = vmatprep.subr.mxu0 %v379_v0 }
   0xd   :  { %361 = vmatpush3.msra.mxu0 %v200_v16 }
   0xe   :  { %362 = vmatprep.subr.mxu0 %v379_v0 }
   0xf   :  { %363 = vmatpush3.msra.mxu0 %v199_v17 }
  0x10   :  { %364 = vmatprep.subr.mxu0 %v379_v0 }
  0x11   :  { %365 = vmatpush3.msra.mxu0 %v198_v18 }
  0xc9   :  { %v108_v12 = vpop.f32.mrf.mxu0 }
  0xca   :  { %v109_v13 = vadd.f32 %v315_v11, %v108_v12 }
  0xcb   :  { %v346_v14 = vpop.f32.mrf.mxu0 }
  0xcc   :  { %v112_v15 = vmax.f32 %v109_v13, 0.0 }
  0xce   :  { %356 = vmatmul.mubr.msk.f32.vlgmr.msra.gmra.mxu1 %vm38_vm1, %v112_v15 }
 0x18e   :  { %v193_v20 = vpop.f32.mrf.mxu1 }
 0x18f   :  { %v194_v21 = vadd.f32 %v317_v19, %v193_v20 }
 0x190   :  { %v357_v22 = vpop.f32.mrf.mxu1 }
 0x191   :  { %v197_v23 = vmax.f32 %v194_v21, 0.0 }
 0x193   :  { %367 = vmatmul.mubr.msk.f32.vlgmr.msra.gmra.mxu0 %vm38_vm1, %v197_v23 }
 0x253   :  { %v278_v27 = vpop.f32.mrf.mxu0 }
 0x254   :  { %v279_v28 = vadd.f32 %v319_v26, %v278_v27 }
 0x255   :  { %v368_v29 = vpop.f32.mrf.mxu0 }
 0x256   :  { %v288_v30 = vsel %vm284_vm2, %v279_v28, -inf }
 0x257   :  { %289 = vmax.xlane.f32.xlu0 %v288_v30 }
 0x2e0   :  { %v290_v31 = vpop.xlane.xlu0 %289 }
 0x2e1   :  { %v291_v32 = vsub.f32 %v279_v28, %v290_v31 }
 0x2e3   :  { %v292_v33 = vsel %vm284_vm2, %v291_v32, 0.0 }
 0x2e4   :  { %v293_v34 = vmul.f32 1.442695, %v292_v33 }
 0x2e6   :  { %371 = vpow2.f32 %v293_v34 }
 0x2e7   :  { %373 = vtanh.f32 %v279_v28 }
 0x2f3   :  { %v372_v35 = vpop.eup %371 }
 0x2f4   :  { %v295_v36 = vsel %vm284_vm2, %v372_v35, 0.0  ;;  %v374_v37 = vpop.eup %373 }
 0x2f5   :  { %296 = vadd.xlane.f32.xlu0 %v295_v36  ;;  %v301_v38 = vadd.f32 1.0, %v374_v37 }
 0x2f7   :  { %v304_v39 = vmul.f32 2.5, %v301_v38  ;;  %v302_v43 = vmul.f32 2.0, %v301_v38 }
 0x2f9   :  { %v305_v40 = vadd.f32 -5.0, %v304_v39  ;;  %v303_v46 = vadd.f32 -2.0, %v302_v43 }
 0x2fb   :  { %v306_v41 = vmul.f32 1.442695, %v305_v40 }
 0x2fd   :  { %375 = vpow2.f32 %v306_v41 }
 0x30a   :  { %v376_v44 = vpop.eup %375 }
 0x30b   :  { %v308_v48 = vsel %vm287_vm5, %v303_v46, %v376_v44 }
 0x37e   :  { %v297_v42 = vpop.xlane.xlu0 %296 }
 0x37f   :  { %377 = vrcp.f32 %v297_v42 }
 0x38c   :  { %v378_v45 = vpop.eup %377 }
 0x38d   :  { %v299_v47 = vmul.f32 %v378_v45, %v372_v35 }
 0x38f   :  { %v309_v49 = vsel %vm284_vm2, %v299_v47, %v308_v48 }
 0x390   :  { %310 = vst [vmem:[%s489_s7] sm:$0xff] %v309_v49 }

</bundles_post_ra>
